<compile_context>
chip_gen: v7x
topology: tpu7x:2x2x1
jax: 0.10.0
libtpu: 0.0.40
codegen_flags: <defaults>
</compile_context>

<pallas_src>
import functools

import jax
import jax.numpy as jnp
from jax.experimental import pallas as pl
from jax.experimental.pallas import tpu as pltpu


def _rmsnorm_kernel(x_ref, o_ref, *, eps):
    # Block: (B_blk, C, TILE). Channel reduction is along sublanes (axis=1);
    # pixels map to lanes and batch rows are independent.
    x = x_ref[...].astype(jnp.float32)
    ms = jnp.mean(x * x, axis=1, keepdims=True)        # (B_blk, 1, TILE)
    inv_rms = jax.lax.rsqrt(ms + eps)                   # matches rsqrt(sum_sq/C + eps)
    o_ref[...] = (x * inv_rms).astype(o_ref.dtype)


def _round_up(a: int, b: int) -> int:
    return ((a + b - 1) // b) * b


def _choose_blocks(N: int, C: int, M: int, dtype, target_io_bytes: int = 2 * 1024 * 1024):
    """Pick (batch_block, lane_tile, vmem_estimate) so one I/O block is ~target_io_bytes.

    Bigger blocks buy no bandwidth past ~1-4 MiB but inflate the (unaccounted)
    f32 upcast working set, which matters on v7x's 64 MiB VMEM.
    """
    itemsize = jnp.dtype(dtype).itemsize
    pack = max(8, 32 // itemsize)              # sublane packing: 8 f32 / 16 bf16 / 32 i8
    c_pad = _round_up(C, pack)                 # padded channel extent in VMEM
    m_pad_full = max(_round_up(M, 128), 128)   # padded lane extent of the full row

    max_elems = max(target_io_bytes // itemsize, c_pad * 128)
    lanes_budget = max(max_elems // c_pad, 128)

    if lanes_budget >= m_pad_full:
        # Whole spatial extent fits in one block -> also block over batch to
        # amortize per-grid-step overhead on small feature maps.
        tile = M
        m_pad = m_pad_full
        b_blk = max(1, min(N, max_elems // (c_pad * m_pad_full)))
    else:
        # Large spatial extent -> tile lanes in multiples of 128, one batch row.
        tile = min((lanes_budget // 128) * 128, (M // 128) * 128)
        tile = max(tile, 128)
        m_pad = tile
        b_blk = 1

    # Keep at least two grid steps for megacore sharding when splitting still
    # leaves a usefully large (>= ~1 MiB) block per step.
    n_blocks = pl.cdiv(N, b_blk) * pl.cdiv(M, tile)
    block_io_bytes = b_blk * c_pad * m_pad * itemsize
    if n_blocks < 2 and N >= 2 and block_io_bytes >= 2 * 1024 * 1024:
        b_blk = max(1, b_blk // 2)

    # Estimated VMEM per grid step: in + out, double-buffered (4x I/O block),
    # plus ~2 f32-sized compiler temporaries for the upcast math.
    vmem_est = b_blk * c_pad * m_pad * (4 * itemsize + 2 * 4)
    return b_blk, tile, vmem_est


def rmsnorm_pallas(x: jax.Array, eps: float = 1e-5) -> jax.Array:
    """RMS-normalize x of shape (N, C, H, W) along the channel axis."""
    N, C, H, W = x.shape
    M = H * W
    itemsize = jnp.dtype(x.dtype).itemsize
    x2 = x.reshape(N, C, M)  # contiguous view, no data movement

    b_blk, tile, vmem_est = _choose_blocks(N, C, M, x.dtype)
    NB = pl.cdiv(N, b_blk)
    T = pl.cdiv(M, tile)

    # Scoped VMEM limit: estimated working set + 50% headroom, never below the
    # v5e-friendly 32 MiB and never above v7x's 64 MiB physical VMEM per TC.
    vmem_limit = min(max(32 * 1024 * 1024, (vmem_est * 3) // 2), 64 * 1024 * 1024)
    # TODO(synk): for extremely large C (c_pad*128 f32 working set > 64 MiB) a
    # two-pass channel-split (accumulate sum-of-squares, then normalize) is needed.

    out = pl.pallas_call(
        functools.partial(_rmsnorm_kernel, eps=eps),
        out_shape=jax.ShapeDtypeStruct((N, C, M), x.dtype),
        grid_spec=pl.GridSpec(
            grid=(NB, T),
            in_specs=[pl.BlockSpec((b_blk, C, tile), lambda b, t: (b, 0, t))],
            out_specs=pl.BlockSpec((b_blk, C, tile), lambda b, t: (b, 0, t)),
        ),
        compiler_params=pltpu.CompilerParams(
            dimension_semantics=("parallel", "parallel"),
            vmem_limit_bytes=vmem_limit,
        ),
        cost_estimate=pl.CostEstimate(
            flops=3 * N * C * M,                 # square, accumulate, scale
            transcendentals=N * M,               # one rsqrt per pixel
            bytes_accessed=2 * N * C * M * itemsize,
        ),
    )(x2)

    return out.reshape(N, C, H, W)


def rmsnorm_ref(x: jax.Array, eps: float = 1e-5) -> jax.Array:
    xf = x.astype(jnp.float32)
    ms = jnp.mean(xf * xf, axis=1, keepdims=True)
    return (xf * jax.lax.rsqrt(ms + eps)).astype(x.dtype)


if __name__ == "__main__":
    key = jax.random.PRNGKey(0)
    N, C, H, W = 2, 4, 16, 16
    x = jax.random.normal(key, (N, C, H, W), dtype=jnp.float32)

    y = rmsnorm_pallas(x, eps=1e-5)
    y = jax.block_until_ready(y)

    y_ref = rmsnorm_ref(x, eps=1e-5)
    assert y.shape == x.shape and y.dtype == x.dtype
    assert jnp.allclose(y, y_ref, atol=1e-5, rtol=1e-5)

    # Also exercise the lane-tiled (large spatial) path for correctness.
    x_big = jax.random.normal(jax.random.PRNGKey(1), (2, 8, 64, 96), dtype=jnp.float32)
    y_big = jax.block_until_ready(rmsnorm_pallas(x_big, eps=1e-5))
    assert jnp.allclose(y_big, rmsnorm_ref(x_big, eps=1e-5), atol=1e-5, rtol=1e-5)

    print("KERNEL_OK")
</pallas_src>

<mosaic_0001>
module attributes {stable_mosaic.version = 11 : i64} {
  func.func @_rmsnorm_kernel(%arg0: i32, %arg1: i32, %arg2: memref<2x4x256xf32, #tpu.memory_space<vmem>>, %arg3: memref<2x4x256xf32, #tpu.memory_space<vmem>>) attributes {dimension_semantics = [#tpu.dimension_semantics<parallel>, #tpu.dimension_semantics<parallel>], iteration_bounds = array<i64: 1, 1>, scalar_prefetch = 0 : i64, scratch_operands = 0 : i64, tpu.core_type = #tpu.core_type<tc>, window_params = [{transform_indices = @transform_0, window_bounds = array<i64: 2, 4, 256>}, {transform_indices = @transform_1, window_bounds = array<i64: 2, 4, 256>}]} {
    %c0 = arith.constant 0 : index
    %c0_0 = arith.constant 0 : index
    %c0_1 = arith.constant 0 : index
    %0 = vector.load %arg2[%c0, %c0_0, %c0_1] : memref<2x4x256xf32, #tpu.memory_space<vmem>>, vector<2x4x256xf32>
    %1 = arith.mulf %0, %0 : vector<2x4x256xf32>
    %cst = arith.constant dense<0.000000e+00> : vector<2x256xf32>
    %2 = vector.multi_reduction <add>, %1, %cst [1] : vector<2x4x256xf32> to vector<2x256xf32>
    %3 = vector.shape_cast %2 : vector<2x256xf32> to vector<2x1x256xf32>
    %cst_2 = arith.constant 4.000000e+00 : f32
    %4 = vector.broadcast %cst_2 : f32 to vector<2x1x256xf32>
    %5 = arith.divf %3, %4 : vector<2x1x256xf32>
    %cst_3 = arith.constant 9.99999974E-6 : f32
    %6 = vector.broadcast %cst_3 : f32 to vector<2x1x256xf32>
    %7 = arith.addf %5, %6 : vector<2x1x256xf32>
    %8 = math.rsqrt %7 : vector<2x1x256xf32>
    %9 = vector.broadcast %8 : vector<2x1x256xf32> to vector<2x4x256xf32>
    %10 = arith.mulf %0, %9 : vector<2x4x256xf32>
    %c0_4 = arith.constant 0 : index
    %c0_5 = arith.constant 0 : index
    %c0_6 = arith.constant 0 : index
    %11 = vector.load %arg3[%c0_4, %c0_5, %c0_6] : memref<2x4x256xf32, #tpu.memory_space<vmem>>, vector<2x4x256xf32>
    tpu.vector_store %arg3[%c0_4, %c0_5, %c0_6], %10 {strides = array<i32>} : memref<2x4x256xf32, #tpu.memory_space<vmem>>, vector<2x4x256xf32>,
    return
  }
  func.func @transform_0(%arg0: i32, %arg1: i32) -> (i32, i32, i32) {
    %c0_i32 = arith.constant 0 : i32
    %c0_i32_0 = arith.constant 0 : i32
    return %arg0, %c0_i32, %arg1 : i32, i32, i32
  }
  func.func @transform_1(%arg0: i32, %arg1: i32) -> (i32, i32, i32) {
    %c0_i32 = arith.constant 0 : i32
    %c0_i32_0 = arith.constant 0 : i32
    return %arg0, %c0_i32, %arg1 : i32, i32, i32
  }
}

</mosaic_0001>

<bundles_post_ra>
// kernel: tpu_custom_call.1
= control target key start
LH: loop header
LB: loop body
LE: loop exit
PB: predicated region body
PF: predicated region fallthrough
CT: control target
= control target key end

     0   :  { %6 = vsyncpa [#allocation3], 0  ;;  %s208_s0 = inlined_call_operand.hbm [shape: f32[2,4,256], index: 0, kind: input, shape index: {}]   ;;  %s209_s1 = inlined_call_operand.hbm [shape: f32[2,4,256], index: 1, kind: output, shape index: {}]  }
   0x1   :  { %7 = vsyncpa [#allocation4], 0  ;;  %s164_s6 = smov [#allocation2]   ;;  %s116_s10 = scalar_lea.hbm %s208_s0, 256 }
   0x2   :  { %s13_s7 = sshll.u32 %s164_s6, 4  ;;  %p117_p0 = scmp.ne.s32.totalorder %s208_s0, %s116_s10  ;;  %s14_s7 = int_to_ptr.vmem [resolvable:$true] %s13_s7 }
   0x3   :  { %p120_p1 = scmp.lt.u32.totalorder %s116_s10, %s208_s0 }
   0x5   :  { %p122_p2 = pnand %p120_p1, %p117_p0 }
   0x7   :  { %125 = shalt.err (!%p122_p2)
}
   0x8   :  { %s126_s15 = scalar_lea.vmem %s14_s7, 256  ;;  %p131_p4 = scmp.lt.s32.totalorder %s14_s7, %s14_s7 }
   0x9   :  { %p127_p3 = scmp.ne.s32.totalorder %s14_s7, %s126_s15  ;;  %p132_p5 = scmp.lt.s32.totalorder %s126_s15, %s126_s15 }
   0xb   :  { %p133_p6 = por %p132_p5, %p131_p4 }
   0xd   :  { %p134_p7 = pnand %p133_p6, %p127_p3 }
   0xf   :  { %137 = shalt.err (!%p134_p7)
}
  0x10   :  { %s165_s16 = smov 128   ;;  %s166_s17 = smov 8  }
  0x11   :  { %19 = dma.hbm_to_vmem [thread:$0]  %s208_s0, 256, %s14_s7, [#allocation3], %s165_s16, %s165_s16, %s166_s17  }
  0x12   :  { %160 = dma.done.wait [#allocation3], 256  }
  0x13   :  { %161 = vsyncadd [#allocation3], 4294967040  ;;  %v23_v0 = vld [vmem:[#allocation2] sm:$0xff]  ;;  %vm33_vm0 = vcmask 1043456   ;;  %v24_v1 = vld [vmem:[#allocation2 + $0x8] sm:$0xff]  ;;  %s167_s0 = smov [#allocation5]  }
  0x14   :  { %v25_v2 = vmul.f32 %v23_v0, %v23_v0  ;;  %v26_v3 = vmul.f32 %v24_v1, %v24_v1  ;;  %s92_s20 = sshll.u32 %s167_s0, 4  ;;  %s93_s20 = int_to_ptr.vmem [resolvable:$true] %s92_s20 }
  0x15   :  { %s138_s21 = scalar_lea.vmem %s93_s20, 256  ;;  %p143_p9 = scmp.lt.s32.totalorder %s93_s20, %s93_s20 }
  0x16   :  { %v29_v4 = vcombine.high %v25_v2, %v25_v2  ;;  %v34_v5 = vsel %vm33_vm0, %v25_v2, 0.0  ;;  %v30_v6 = vcombine.high %v26_v3, %v26_v3  ;;  %v48_v7 = vsel %vm33_vm0, %v26_v3, 0.0  ;;  %p139_p8 = scmp.ne.s32.totalorder %s93_s20, %s138_s21  ;;  %p144_p10 = scmp.lt.s32.totalorder %s138_s21, %s138_s21 }
  0x17   :  { %v35_v8 = vrot.slane %v34_v5, 4  ;;  %v49_v9 = vrot.slane %v48_v7, 4 }
  0x18   :  { %v41_v10 = vsel %vm33_vm0, %v29_v4, 0.0  ;;  %v55_v11 = vsel %vm33_vm0, %v30_v6, 0.0  ;;  %p145_p11 = por %p144_p10, %p143_p9 }
  0x19   :  { %v36_v12 = vadd.f32 %v35_v8, %v34_v5  ;;  %v42_v13 = vrot.slane %v41_v10, 4  ;;  %v50_v14 = vadd.f32 %v49_v9, %v48_v7  ;;  %v56_v15 = vrot.slane %v55_v11, 4 }
  0x1a   :  { %p146_p12 = pnand %p145_p11, %p139_p8 }
  0x1b   :  { %v37_v16 = vrot.slane %v36_v12, 2  ;;  %v43_v17 = vadd.f32 %v42_v13, %v41_v10  ;;  %v51_v18 = vrot.slane %v50_v14, 2  ;;  %v57_v19 = vadd.f32 %v56_v15, %v55_v11 }
  0x1d   :  { %v38_v20 = vadd.f32 %v37_v16, %v36_v12  ;;  %v44_v21 = vrot.slane %v43_v17, 2  ;;  %v52_v22 = vadd.f32 %v51_v18, %v50_v14  ;;  %v58_v23 = vrot.slane %v57_v19, 2 }
  0x1f   :  { %v39_v24 = vrot.slane %v38_v20, 1  ;;  %v45_v25 = vadd.f32 %v44_v21, %v43_v17  ;;  %v53_v26 = vrot.slane %v52_v22, 1  ;;  %v59_v27 = vadd.f32 %v58_v23, %v57_v19 }
  0x21   :  { %v40_v28 = vadd.f32 %v39_v24, %v38_v20  ;;  %v46_v29 = vrot.slane %v45_v25, 1  ;;  %v54_v30 = vadd.f32 %v53_v26, %v52_v22  ;;  %v60_v31 = vrot.slane %v59_v27, 1 }
  0x23   :  { %v47_v32 = vadd.f32 %v46_v29, %v45_v25  ;;  %v63_v33 = vmul.f32 0.25, %v40_v28  ;;  %v61_v34 = vadd.f32 %v60_v31, %v59_v27  ;;  %v65_v35 = vmul.f32 0.25, %v54_v30 }
  0x25   :  { %v64_v36 = vmul.f32 0.25, %v47_v32  ;;  %v67_v37 = vadd.f32 1e-05, %v63_v33  ;;  %v66_v38 = vmul.f32 0.25, %v61_v34  ;;  %v69_v39 = vadd.f32 1e-05, %v65_v35 }
  0x27   :  { %v68_v40 = vadd.f32 1e-05, %v64_v36  ;;  %108 = vrsqrt.f32 %v67_v37  ;;  %v70_v41 = vadd.f32 1e-05, %v66_v38 }
  0x28   :  { %110 = vrsqrt.f32 %v69_v39 }
  0x29   :  { %112 = vrsqrt.f32 %v68_v40 }
  0x2a   :  { %114 = vrsqrt.f32 %v70_v41 }
  0x31   :  { %v109_v42 = vpop.eup %108 }
  0x32   :  { %v111_v43 = vpop.eup %110 }
  0x33   :  { %v113_v44 = vpop.eup %112 }
  0x34   :  { %v115_v45 = vpop.eup %114  ;;  %v79_v46 = vcombine.low %v109_v42, %v113_v44 }
  0x35   :  { %v80_v47 = vcombine.low %v111_v43, %v115_v45 }
  0x36   :  { %v83_v48 = vmul.f32 %v79_v46, %v23_v0 }
  0x37   :  { %v84_v49 = vmul.f32 %v80_v47, %v24_v1 }
  0x38   :  { %85 = vst [vmem:[#allocation5] sm:$0xff] %v83_v48 }
  0x39   :  { %86 = vst [vmem:[#allocation5 + $0x8] sm:$0xff] %v84_v49 }
  0x3a   :  { %149 = shalt.err (!%p146_p12)
}
  0x3b   :  { %s150_s24 = scalar_lea.hbm %s209_s1, 256 }
  0x3c   :  { %p151_p13 = scmp.ne.s32.totalorder %s209_s1, %s150_s24  ;;  %p154_p0 = scmp.lt.u32.totalorder %s150_s24, %s209_s1 }
  0x3e   :  { %p156_p1 = pnand %p154_p0, %p151_p13 }
  0x40   :  { %159 = shalt.err (!%p156_p1)
}
  0x41   :  { %98 = dma.vmem_to_hbm [thread:$0]  %s93_s20, 256, %s209_s1, [#allocation4], %s165_s16, %s165_s16, %s166_s17  }
  0x42   :  { %162 = dma.done.wait [#allocation4], 256  }
  0x43   :  { %163 = vsyncadd [#allocation4], 4294967040 }
  0x44   :  { %102 = vsyncpa [#allocation3], 1 }
  0x45   :  { %103 = vsyncpa [#allocation4], 1 }

</bundles_post_ra>
